<compile_context>
chip_gen: v5e
topology: v5e:2x2
jax: 0.10.0
libtpu: 0.0.40
codegen_flags: <defaults>
</compile_context>

<pallas_src>
import functools
import math

import jax
import jax.numpy as jnp
import numpy as np
from jax.experimental import pallas as pl
from jax.experimental.pallas import tpu as pltpu

# Hyper-parameters from MultiSimilarityLoss.__init__ (no learnable weights).
THRESH = 0.5
MARGIN = 0.1
ALPHA = 2.0
BETA = 50.0
SCALE_POS = 2.0
SCALE_NEG = 40.0
EPSILON = 1e-5

# exp(+-c*(sim-THRESH)) == exp(+-c*sim) * CONST ; the constant is folded in
# once per anchor row instead of subtracting THRESH on every slab element.
_POS_CONST = math.exp(ALPHA * THRESH)     # e^{+1}
_NEG_CONST = math.exp(-BETA * THRESH)     # e^{-25}

# Sentinel written on the diagonal of the sim slab: >= 1 - EPSILON so the
# self-pair can never qualify as a positive pair regardless of matmul
# rounding, and small enough that exp(BETA * sentinel) stays finite.
_DIAG_SENTINEL = 1.5


def _round_up(x, m):
    return (x + m - 1) // m * m


def _ms_loss_kernel(feats_ref, feats_t_ref, lab_col_ref, lab_row_ref, out_ref,
                    sim_ref, *, b_true, tn):
    """One grid step: per-anchor MS loss for a (TM,) tile of anchor rows."""
    tm = feats_ref.shape[0]            # static row-tile size
    bp = feats_t_ref.shape[1]          # static padded batch / column size
    n_chunks = bp // tn                # static chunk count

    f32 = jnp.float32
    pinf = f32(jnp.inf)
    ninf = f32(-jnp.inf)
    one_meps = f32(1.0 - EPSILON)

    lhs = feats_ref[...]                                    # (TM, Dp)
    lab_col = lab_col_ref[...]                              # (TM, 1) int32

    row0 = pl.program_id(0) * tm
    row_ids = row0 + jax.lax.broadcasted_iota(jnp.int32, (tm, 1), 0)
    row_valid = row_ids < b_true                            # (TM, 1)

    # ---- Stage A: chunked MXU matmul into the VMEM sim scratch -------------
    # (bounds the dot's transient to (TM, TN) instead of (TM, Bp)).
    def _store_sim(c, carry):
        c0 = pl.multiple_of(c * tn, tn)
        sim_ref[:, pl.ds(c0, tn)] = jnp.dot(
            lhs, feats_t_ref[:, pl.ds(c0, tn)],
            preferred_element_type=jnp.float32)
        return carry

    jax.lax.fori_loop(0, n_chunks, _store_sim, 0)

    # ---- Explicit self-pair exclusion (correctness review item) ------------
    # The diagonal of this row tile lives in columns [row0, row0 + TM).
    d0 = pl.multiple_of(row0, tm)
    eye = (jax.lax.broadcasted_iota(jnp.int32, (tm, 1), 0) ==
           jax.lax.broadcasted_iota(jnp.int32, (1, tm), 1))
    sim_ref[:, pl.ds(d0, tm)] = jnp.where(eye, f32(_DIAG_SENTINEL),
                                          sim_ref[:, pl.ds(d0, tm)])

    # ---- Stage B (pass 1): per-anchor min positive / max negative sim ------
    def _pass1(c, carry):
        min_pos, max_neg = carry
        c0 = pl.multiple_of(c * tn, tn)
        sim = sim_ref[:, pl.ds(c0, tn)]                     # (TM, TN) f32
        lab_row = lab_row_ref[:, pl.ds(c0, tn)]             # (1, TN) int32
        col_ids = c0 + jax.lax.broadcasted_iota(jnp.int32, (1, tn), 1)
        col_valid = col_ids < b_true                        # (1, TN)
        same = lab_col == lab_row                           # (TM, TN)
        pos_m = same & col_valid & (sim < one_meps)         # pos_pair_ members
        neg_m = (~same) & col_valid                         # neg_pair_ members
        min_pos = jnp.minimum(
            min_pos,
            jnp.min(jnp.where(pos_m, sim, pinf), axis=1, keepdims=True))
        max_neg = jnp.maximum(
            max_neg,
            jnp.max(jnp.where(neg_m, sim, ninf), axis=1, keepdims=True))
        return min_pos, max_neg

    min_pos, max_neg = jax.lax.fori_loop(
        0, n_chunks, _pass1,
        (jnp.full((tm, 1), pinf, f32), jnp.full((tm, 1), ninf, f32)))

    # Hoisted per-row mining thresholds (review: keep MARGIN off the slab).
    neg_thr = min_pos - f32(MARGIN)                     # negatives: sim > neg_thr
    pos_cut = jnp.minimum(max_neg + f32(MARGIN), one_meps)  # positives: sim < pos_cut
    # Anchor validity:  min_pos < pos_cut  <=>  has_pos and any(pos_pair);
    # max_neg > neg_thr <=> has_neg and any(neg_pair)  (the +/-inf sentinels
    # make separate has_pos / has_neg checks redundant).
    valid = (max_neg > neg_thr) & (min_pos < pos_cut) & row_valid

    # ---- Stage C (pass 2): hard-mined exponential sums ----------------------
    def _pass2(c, carry):
        pos_sum, neg_sum = carry
        c0 = pl.multiple_of(c * tn, tn)
        sim = sim_ref[:, pl.ds(c0, tn)]
        lab_row = lab_row_ref[:, pl.ds(c0, tn)]
        col_ids = c0 + jax.lax.broadcasted_iota(jnp.int32, (1, tn), 1)
        col_valid = col_ids < b_true
        same = lab_col == lab_row
        pos_sel = same & col_valid & (sim < pos_cut)
        neg_sel = (~same) & col_valid & (sim > neg_thr)
        pos_sum = pos_sum + jnp.sum(
            jnp.where(pos_sel, jnp.exp(f32(-ALPHA) * sim), f32(0.0)),
            axis=1, keepdims=True)
        neg_sum = neg_sum + jnp.sum(
            jnp.where(neg_sel, jnp.exp(f32(BETA) * sim), f32(0.0)),
            axis=1, keepdims=True)
        return pos_sum, neg_sum

    pos_sum, neg_sum = jax.lax.fori_loop(
        0, n_chunks, _pass2,
        (jnp.zeros((tm, 1), f32), jnp.zeros((tm, 1), f32)))

    pos_sum = pos_sum * f32(_POS_CONST)     # fold exp(+ALPHA*THRESH)
    neg_sum = neg_sum * f32(_NEG_CONST)     # fold exp(-BETA*THRESH)

    per_anchor = (f32(1.0 / SCALE_POS) * jnp.log1p(pos_sum)
                  + f32(1.0 / SCALE_NEG) * jnp.log1p(neg_sum))
    out_ref[...] = jnp.where(valid, per_anchor, f32(0.0))


def _vmem_capacity_bytes():
    try:
        return int(pltpu.get_tpu_info().vmem_capacity_bytes)
    except Exception:
        return 64 * 1024 * 1024            # conservative: assume v7x-sized VMEM


def _pick_tiling(b, dp, itemsize):
    """Generation-aware row tile, padded batch, column chunk, VMEM limit."""
    vmem_cap = _vmem_capacity_bytes()
    if vmem_cap >= 96 * 1024 * 1024:       # v5e / v6e: 128 MiB physical VMEM
        tm, vmem_limit, small_vmem = 512, 96 * 1024 * 1024, False
    else:                                   # v7x: 64 MiB physical, 2 TensorCores
        tm, vmem_limit, small_vmem = 256, 40 * 1024 * 1024, True

    # v7x: keep >= 2 grid steps so the "parallel" row axis feeds both TCs.
    if small_vmem:
        while tm > 128 and (b + tm - 1) // tm < 2:
            tm //= 2

    # Shrink the row tile if the static VMEM estimate would not fit.
    while True:
        bp = _round_up(max(b, 1), tm)
        tn = next(t for t in (512, 256, 128) if bp % t == 0)
        est = (dp * bp * itemsize           # resident transposed RHS (x1, Buffered(1))
               + tm * bp * 4                # f32 sim scratch
               + 2 * tm * dp * itemsize     # double-buffered LHS row tiles
               + 8 * tm * tn * 4            # per-chunk temporaries (headroom)
               + 8 * bp * 4)                # labels / output / misc
        if tm == 128 or est <= int(0.9 * vmem_limit):
            break
        tm //= 2
    # Never leave the (advisory) limit below the estimate: raise it toward
    # physical capacity for very large batches rather than failing to compile.
    vmem_limit = max(vmem_limit, min(est + (8 << 20), int(0.92 * vmem_cap)))
    return tm, bp, tn, vmem_limit


@functools.partial(jax.jit, static_argnames=("compute_dtype",))
def multi_similarity_loss(feats, labels, compute_dtype=jnp.bfloat16):
    """Multi-Similarity loss.  feats: (B, D) float, labels: (B,) int.

    compute_dtype selects the MXU input precision: bf16 (default, half the
    HBM/VMEM traffic) or jnp.float32 for exact parity with the f32 reference.
    """
    assert feats.shape[0] == labels.shape[0], (
        f"feats.size(0): {feats.shape[0]} != labels.size(0): {labels.shape[0]}")
    B, D = feats.shape
    Dp = _round_up(max(D, 1), 128)
    itemsize = np.dtype(compute_dtype).itemsize
    tm, bp, tn, vmem_limit = _pick_tiling(B, Dp, itemsize)

    # Pad to lane-dense multiples of 128 / TM; padded rows & columns are
    # masked inside the kernel and the final divide uses the true batch size.
    feats_p = jnp.zeros((bp, Dp), jnp.float32).at[:B, :D].set(
        feats.astype(jnp.float32))
    feats_c = feats_p.astype(compute_dtype)
    feats_t = feats_c.T                         # one-time wrapper transpose

    lab_p = jnp.full((bp,), -1, jnp.int32).at[:B].set(labels.astype(jnp.int32))
    lab_col = lab_p.reshape(bp, 1)
    lab_row = lab_p.reshape(1, bp)

    kernel = functools.partial(_ms_loss_kernel, b_true=B, tn=tn)

    cost = pl.CostEstimate(
        flops=2 * bp * bp * Dp,
        transcendentals=2 * bp * bp,
        bytes_accessed=2 * bp * Dp * itemsize + 3 * bp * 4,
    )

    per_anchor = pl.pallas_call(
        kernel,
        out_shape=jax.ShapeDtypeStruct((bp, 1), jnp.float32),
        grid=(bp // tm,),
        in_specs=[
            # Anchor-row feature tiles: pipelined (default double-buffered).
            pl.BlockSpec((tm, Dp), lambda i: (i, 0)),
            # Transposed features: grid-invariant -> VMEM-resident with a
            # single buffer (review: Buffered(1) halves the largest consumer).
            pl.BlockSpec((Dp, bp), lambda i: (0, 0),
                         pipeline_mode=pl.Buffered(1)),
            # Anchor labels (column vector), per-tile.
            pl.BlockSpec((tm, 1), lambda i: (i, 0)),
            # Pair labels (row vector): grid-invariant, single buffer.
            pl.BlockSpec((1, bp), lambda i: (0, 0),
                         pipeline_mode=pl.Buffered(1)),
        ],
        out_specs=pl.BlockSpec((tm, 1), lambda i: (i, 0)),
        scratch_shapes=[pltpu.VMEM((tm, bp), jnp.float32)],   # sim slab
        compiler_params=pltpu.CompilerParams(
            dimension_semantics=("parallel",),
            vmem_limit_bytes=vmem_limit,
        ),
        cost_estimate=cost,
    )(feats_c, feats_t, lab_col, lab_row)

    # Sum only real anchors; invalid / padded anchors were zeroed in-kernel.
    return jnp.sum(per_anchor[:B, 0]) / jnp.float32(B)


def _reference_loss(feats, labels):
    """Pure-JAX reference mirroring the PyTorch per-anchor loop (vectorized).

    The self-pair is excluded explicitly; for L2-normalized f32 features this
    is exactly what the PyTorch `sim < 1 - eps` test does, and it matches the
    kernel's numerically robust diagonal exclusion.
    """
    feats = feats.astype(jnp.float32)
    n = feats.shape[0]
    sim = feats @ feats.T
    eye = jnp.eye(n, dtype=bool)
    same = labels[None, :] == labels[:, None]
    pos_mask = same & (sim < 1.0 - EPSILON) & (~eye)
    neg_mask = ~same
    has_pos = jnp.any(pos_mask, axis=1)
    has_neg = jnp.any(neg_mask, axis=1)
    min_pos = jnp.min(jnp.where(pos_mask, sim, jnp.inf), axis=1, keepdims=True)
    max_neg = jnp.max(jnp.where(neg_mask, sim, -jnp.inf), axis=1, keepdims=True)
    neg_sel = neg_mask & (sim + MARGIN > min_pos)
    pos_sel = pos_mask & (sim - MARGIN < max_neg)
    valid = has_pos & has_neg & jnp.any(neg_sel, axis=1) & jnp.any(pos_sel, axis=1)
    pos_sum = jnp.sum(jnp.where(pos_sel, jnp.exp(-ALPHA * (sim - THRESH)), 0.0), axis=1)
    neg_sum = jnp.sum(jnp.where(neg_sel, jnp.exp(BETA * (sim - THRESH)), 0.0), axis=1)
    per = (1.0 / SCALE_POS) * jnp.log1p(pos_sum) + (1.0 / SCALE_NEG) * jnp.log1p(neg_sum)
    per = jnp.where(valid, per, 0.0)
    return jnp.sum(per) / feats.shape[0]


if __name__ == "__main__":
    key = jax.random.PRNGKey(0)
    kf, kl = jax.random.split(key)
    B, D = 8, 32
    feats = jax.random.normal(kf, (B, D), dtype=jnp.float32)
    # L2-normalize (standard metric-learning input; keeps sim in [-1, 1]).
    feats = feats / jnp.linalg.norm(feats, axis=1, keepdims=True)
    labels = jax.random.randint(kl, (B,), 0, 3, dtype=jnp.int32)

    # f32 MXU path vs. the true f32 reference (parity with the PyTorch module).
    loss_f32 = jax.block_until_ready(
        multi_similarity_loss(feats, labels, compute_dtype=jnp.float32))
    ref_f32 = jax.block_until_ready(_reference_loss(feats, labels))
    assert jnp.allclose(loss_f32, ref_f32, atol=2e-3, rtol=2e-3), (loss_f32, ref_f32)

    # Default bf16 MXU path vs. a reference fed the same bf16-rounded features.
    loss_bf16 = jax.block_until_ready(multi_similarity_loss(feats, labels))
    feats_bf = feats.astype(jnp.bfloat16).astype(jnp.float32)
    ref_bf16 = jax.block_until_ready(_reference_loss(feats_bf, labels))
    assert jnp.allclose(loss_bf16, ref_bf16, atol=2e-3, rtol=2e-3), (loss_bf16, ref_bf16)

    print("KERNEL_OK")
</pallas_src>

<mosaic_0001>
module attributes {stable_mosaic.version = 11 : i64} {
  func.func @_ms_loss_kernel(%arg0: i32, %arg1: memref<128x128xf32, #tpu.memory_space<vmem>>, %arg2: memref<128x128xf32, #tpu.memory_space<vmem>>, %arg3: memref<128x1xi32, #tpu.memory_space<vmem>>, %arg4: memref<1x128xi32, #tpu.memory_space<vmem>>, %arg5: memref<128x1xf32, #tpu.memory_space<vmem>>, %arg6: memref<128x128xf32, #tpu.memory_space<vmem>>) attributes {dimension_semantics = [#tpu.dimension_semantics<parallel>], iteration_bounds = array<i64: 1>, scalar_prefetch = 0 : i64, scratch_operands = 1 : i64, tpu.core_type = #tpu.core_type<tc>, window_params = [{transform_indices = @transform_0, window_bounds = array<i64: 128, 128>}, {pipeline_mode = #tpu.pipeline_mode<synchronous>, transform_indices = @transform_1, window_bounds = array<i64: 128, 128>}, {transform_indices = @transform_2, window_bounds = array<i64: 128, 1>}, {pipeline_mode = #tpu.pipeline_mode<synchronous>, transform_indices = @transform_3, window_bounds = array<i64: 1, 128>}, {transform_indices = @transform_4, window_bounds = array<i64: 128, 1>}]} {
    %c0 = arith.constant 0 : index
    %c0_0 = arith.constant 0 : index
    %0 = vector.load %arg1[%c0, %c0_0] : memref<128x128xf32, #tpu.memory_space<vmem>>, vector<128x128xf32>
    %c0_1 = arith.constant 0 : index
    %c0_2 = arith.constant 0 : index
    %1 = vector.load %arg3[%c0_1, %c0_2] : memref<128x1xi32, #tpu.memory_space<vmem>>, vector<128x1xi32>
    %c128_i32 = arith.constant 128 : i32
    %2 = arith.muli %arg0, %c128_i32 : i32
    %3 = tpu.iota {dimensions = array<i32: 0>} : vector<128x1xi32>
    %4 = vector.broadcast %2 : i32 to vector<128x1xi32>
    %5 = arith.addi %4, %3 : vector<128x1xi32>
    %c8_i32 = arith.constant 8 : i32
    %6 = vector.broadcast %c8_i32 : i32 to vector<128x1xi32>
    %7 = arith.cmpi slt, %5, %6 : vector<128x1xi32>
    %c0_i32 = arith.constant 0 : i32
    %c128_i32_3 = arith.constant 128 : i32
    %8 = arith.muli %c0_i32, %c128_i32_3 : i32
    %9 = tpu.assume_multiple %8, 128 : i32
    %c0_4 = arith.constant 0 : index
    %10 = arith.index_cast %9 : i32 to index
    %11 = vector.load %arg2[%c0_4, %10] : memref<128x128xf32, #tpu.memory_space<vmem>>, vector<128x128xf32>
    %cst = arith.constant dense<0.000000e+00> : vector<128x128xf32>
    %12 = tpu.matmul %0, %11, %cst {dimension_numbers = #tpu.dot_dimension_numbers<[1], [0], [0], [1], [0, 0, 1, 1], [], []>} : vector<128x128xf32>, vector<128x128xf32>, vector<128x128xf32> -> vector<128x128xf32>
    %c0_5 = arith.constant 0 : index
    %13 = arith.index_cast %9 : i32 to index
    %14 = vector.load %arg6[%c0_5, %13] : memref<128x128xf32, #tpu.memory_space<vmem>>, vector<128x128xf32>
    tpu.vector_store %arg6[%c0_5, %13], %12 {strides = array<i32>} : memref<128x128xf32, #tpu.memory_space<vmem>>, vector<128x128xf32>,
    %c1_i32 = arith.constant 1 : i32
    %15 = tpu.assume_multiple %2, 128 : i32
    %16 = tpu.iota {dimensions = array<i32: 0>} : vector<128x1xi32>
    %17 = tpu.iota {dimensions = array<i32: 1>} : vector<1x128xi32>
    %18 = vector.broadcast %16 : vector<128x1xi32> to vector<128x128xi32>
    %19 = vector.broadcast %17 : vector<1x128xi32> to vector<128x128xi32>
    %20 = arith.cmpi eq, %18, %19 : vector<128x128xi32>
    %c0_6 = arith.constant 0 : index
    %21 = arith.index_cast %15 : i32 to index
    %22 = vector.load %arg6[%c0_6, %21] : memref<128x128xf32, #tpu.memory_space<vmem>>, vector<128x128xf32>
    %cst_7 = arith.constant 1.500000e+00 : f32
    %23 = vector.broadcast %cst_7 : f32 to vector<128x128xf32>
    %24 = arith.select %20, %23, %22 : vector<128x128xi1>, vector<128x128xf32>
    %c0_8 = arith.constant 0 : index
    %25 = arith.index_cast %15 : i32 to index
    %26 = vector.load %arg6[%c0_8, %25] : memref<128x128xf32, #tpu.memory_space<vmem>>, vector<128x128xf32>
    tpu.vector_store %arg6[%c0_8, %25], %24 {strides = array<i32>} : memref<128x128xf32, #tpu.memory_space<vmem>>, vector<128x128xf32>,
    %cst_9 = arith.constant 0x7F800000 : f32
    %27 = vector.broadcast %cst_9 : f32 to vector<128x1xf32>
    %cst_10 = arith.constant 0xFF800000 : f32
    %28 = vector.broadcast %cst_10 : f32 to vector<128x1xf32>
    %cst_11 = arith.constant 0.999989986 : f32
    %cst_12 = arith.constant 0x7F800000 : f32
    %cst_13 = arith.constant 0xFF800000 : f32
    %c0_i32_14 = arith.constant 0 : i32
    %c128_i32_15 = arith.constant 128 : i32
    %29 = arith.muli %c0_i32_14, %c128_i32_15 : i32
    %30 = tpu.assume_multiple %29, 128 : i32
    %c0_16 = arith.constant 0 : index
    %31 = arith.index_cast %30 : i32 to index
    %32 = vector.load %arg6[%c0_16, %31] : memref<128x128xf32, #tpu.memory_space<vmem>>, vector<128x128xf32>
    %c0_17 = arith.constant 0 : index
    %33 = arith.index_cast %30 : i32 to index
    %34 = vector.load %arg4[%c0_17, %33] : memref<1x128xi32, #tpu.memory_space<vmem>>, vector<1x128xi32>
    %35 = tpu.iota {dimensions = array<i32: 1>} : vector<1x128xi32>
    %36 = vector.broadcast %30 : i32 to vector<1x128xi32>
    %37 = arith.addi %36, %35 : vector<1x128xi32>
    %c8_i32_18 = arith.constant 8 : i32
    %38 = vector.broadcast %c8_i32_18 : i32 to vector<1x128xi32>
    %39 = arith.cmpi slt, %37, %38 : vector<1x128xi32>
    %40 = vector.broadcast %1 : vector<128x1xi32> to vector<128x128xi32>
    %41 = vector.broadcast %34 : vector<1x128xi32> to vector<128x128xi32>
    %42 = arith.cmpi eq, %40, %41 : vector<128x128xi32>
    %43 = vector.broadcast %39 : vector<1x128xi1> to vector<128x128xi1>
    %44 = arith.andi %42, %43 : vector<128x128xi1>
    %45 = vector.broadcast %cst_11 : f32 to vector<128x128xf32>
    %46 = arith.cmpf olt, %32, %45 : vector<128x128xf32>
    %47 = arith.andi %44, %46 : vector<128x128xi1>
    %cst_19 = arith.constant dense<true> : vector<128x128xi1>
    %48 = arith.xori %42, %cst_19 : vector<128x128xi1>
    %49 = vector.broadcast %39 : vector<1x128xi1> to vector<128x128xi1>
    %50 = arith.andi %48, %49 : vector<128x128xi1>
    %51 = vector.broadcast %cst_12 : f32 to vector<128x128xf32>
    %52 = arith.select %47, %32, %51 : vector<128x128xi1>, vector<128x128xf32>
    %cst_20 = arith.constant dense<0x7F800000> : vector<128xf32>
    %53 = vector.multi_reduction <minimumf>, %52, %cst_20 [1] : vector<128x128xf32> to vector<128xf32>
    %54 = vector.shape_cast %53 : vector<128xf32> to vector<128x1xf32>
    %55 = arith.minimumf %27, %54 : vector<128x1xf32>
    %56 = vector.broadcast %cst_13 : f32 to vector<128x128xf32>
    %57 = arith.select %50, %32, %56 : vector<128x128xi1>, vector<128x128xf32>
    %cst_21 = arith.constant dense<0xFF800000> : vector<128xf32>
    %58 = vector.multi_reduction <maximumf>, %57, %cst_21 [1] : vector<128x128xf32> to vector<128xf32>
    %59 = vector.shape_cast %58 : vector<128xf32> to vector<128x1xf32>
    %60 = arith.maximumf %28, %59 : vector<128x1xf32>
    %c1_i32_22 = arith.constant 1 : i32
    %cst_23 = arith.constant 1.000000e-01 : f32
    %61 = vector.broadcast %cst_23 : f32 to vector<128x1xf32>
    %62 = arith.subf %55, %61 : vector<128x1xf32>
    %cst_24 = arith.constant 1.000000e-01 : f32
    %63 = vector.broadcast %cst_24 : f32 to vector<128x1xf32>
    %64 = arith.addf %60, %63 : vector<128x1xf32>
    %cst_25 = arith.constant 0.999989986 : f32
    %65 = vector.broadcast %cst_25 : f32 to vector<128x1xf32>
    %66 = arith.minimumf %64, %65 : vector<128x1xf32>
    %67 = arith.cmpf ogt, %60, %62 : vector<128x1xf32>
    %68 = arith.cmpf olt, %55, %66 : vector<128x1xf32>
    %69 = arith.andi %67, %68 : vector<128x1xi1>
    %70 = arith.andi %69, %7 : vector<128x1xi1>
    %cst_26 = arith.constant 0.000000e+00 : f32
    %71 = vector.broadcast %cst_26 : f32 to vector<128x1xf32>
    %cst_27 = arith.constant 0.000000e+00 : f32
    %72 = vector.broadcast %cst_27 : f32 to vector<128x1xf32>
    %c0_i32_28 = arith.constant 0 : i32
    %c128_i32_29 = arith.constant 128 : i32
    %73 = arith.muli %c0_i32_28, %c128_i32_29 : i32
    %74 = tpu.assume_multiple %73, 128 : i32
    %c0_30 = arith.constant 0 : index
    %75 = arith.index_cast %74 : i32 to index
    %76 = vector.load %arg6[%c0_30, %75] : memref<128x128xf32, #tpu.memory_space<vmem>>, vector<128x128xf32>
    %c0_31 = arith.constant 0 : index
    %77 = arith.index_cast %74 : i32 to index
    %78 = vector.load %arg4[%c0_31, %77] : memref<1x128xi32, #tpu.memory_space<vmem>>, vector<1x128xi32>
    %79 = tpu.iota {dimensions = array<i32: 1>} : vector<1x128xi32>
    %80 = vector.broadcast %74 : i32 to vector<1x128xi32>
    %81 = arith.addi %80, %79 : vector<1x128xi32>
    %c8_i32_32 = arith.constant 8 : i32
    %82 = vector.broadcast %c8_i32_32 : i32 to vector<1x128xi32>
    %83 = arith.cmpi slt, %81, %82 : vector<1x128xi32>
    %84 = vector.broadcast %1 : vector<128x1xi32> to vector<128x128xi32>
    %85 = vector.broadcast %78 : vector<1x128xi32> to vector<128x128xi32>
    %86 = arith.cmpi eq, %84, %85 : vector<128x128xi32>
    %87 = vector.broadcast %83 : vector<1x128xi1> to vector<128x128xi1>
    %88 = arith.andi %86, %87 : vector<128x128xi1>
    %89 = vector.broadcast %66 : vector<128x1xf32> to vector<128x128xf32>
    %90 = arith.cmpf olt, %76, %89 : vector<128x128xf32>
    %91 = arith.andi %88, %90 : vector<128x128xi1>
    %cst_33 = arith.constant dense<true> : vector<128x128xi1>
    %92 = arith.xori %86, %cst_33 : vector<128x128xi1>
    %93 = vector.broadcast %83 : vector<1x128xi1> to vector<128x128xi1>
    %94 = arith.andi %92, %93 : vector<128x128xi1>
    %95 = vector.broadcast %62 : vector<128x1xf32> to vector<128x128xf32>
    %96 = arith.cmpf ogt, %76, %95 : vector<128x128xf32>
    %97 = arith.andi %94, %96 : vector<128x128xi1>
    %cst_34 = arith.constant -2.000000e+00 : f32
    %98 = vector.broadcast %cst_34 : f32 to vector<128x128xf32>
    %99 = arith.mulf %98, %76 : vector<128x128xf32>
    %100 = math.exp %99 : vector<128x128xf32>
    %cst_35 = arith.constant 0.000000e+00 : f32
    %101 = vector.broadcast %cst_35 : f32 to vector<128x128xf32>
    %102 = arith.select %91, %100, %101 : vector<128x128xi1>, vector<128x128xf32>
    %cst_36 = arith.constant dense<0.000000e+00> : vector<128xf32>
    %103 = vector.multi_reduction <add>, %102, %cst_36 [1] : vector<128x128xf32> to vector<128xf32>
    %104 = vector.shape_cast %103 : vector<128xf32> to vector<128x1xf32>
    %105 = arith.addf %71, %104 : vector<128x1xf32>
    %cst_37 = arith.constant 5.000000e+01 : f32
    %106 = vector.broadcast %cst_37 : f32 to vector<128x128xf32>
    %107 = arith.mulf %106, %76 : vector<128x128xf32>
    %108 = math.exp %107 : vector<128x128xf32>
    %cst_38 = arith.constant 0.000000e+00 : f32
    %109 = vector.broadcast %cst_38 : f32 to vector<128x128xf32>
    %110 = arith.select %97, %108, %109 : vector<128x128xi1>, vector<128x128xf32>
    %cst_39 = arith.constant dense<0.000000e+00> : vector<128xf32>
    %111 = vector.multi_reduction <add>, %110, %cst_39 [1] : vector<128x128xf32> to vector<128xf32>
    %112 = vector.shape_cast %111 : vector<128xf32> to vector<128x1xf32>
    %113 = arith.addf %72, %112 : vector<128x1xf32>
    %c1_i32_40 = arith.constant 1 : i32
    %cst_41 = arith.constant 2.71828175 : f32
    %114 = vector.broadcast %cst_41 : f32 to vector<128x1xf32>
    %115 = arith.mulf %105, %114 : vector<128x1xf32>
    %cst_42 = arith.constant 1.38879437E-11 : f32
    %116 = vector.broadcast %cst_42 : f32 to vector<128x1xf32>
    %117 = arith.mulf %113, %116 : vector<128x1xf32>
    %118 = math.log1p %115 : vector<128x1xf32>
    %cst_43 = arith.constant 5.000000e-01 : f32
    %119 = vector.broadcast %cst_43 : f32 to vector<128x1xf32>
    %120 = arith.mulf %119, %118 : vector<128x1xf32>
    %121 = math.log1p %117 : vector<128x1xf32>
    %cst_44 = arith.constant 2.500000e-02 : f32
    %122 = vector.broadcast %cst_44 : f32 to vector<128x1xf32>
    %123 = arith.mulf %122, %121 : vector<128x1xf32>
    %124 = arith.addf %120, %123 : vector<128x1xf32>
    %cst_45 = arith.constant 0.000000e+00 : f32
    %125 = vector.broadcast %cst_45 : f32 to vector<128x1xf32>
    %126 = arith.select %70, %124, %125 : vector<128x1xi1>, vector<128x1xf32>
    %c0_46 = arith.constant 0 : index
    %c0_47 = arith.constant 0 : index
    %127 = vector.load %arg5[%c0_46, %c0_47] : memref<128x1xf32, #tpu.memory_space<vmem>>, vector<128x1xf32>
    tpu.vector_store %arg5[%c0_46, %c0_47], %126 {strides = array<i32>} : memref<128x1xf32, #tpu.memory_space<vmem>>, vector<128x1xf32>,
    return
  }
  func.func @transform_0(%arg0: i32) -> (i32, i32) {
    %c0_i32 = arith.constant 0 : i32
    %c0_i32_0 = arith.constant 0 : i32
    return %arg0, %c0_i32 : i32, i32
  }
  func.func @transform_1(%arg0: i32) -> (i32, i32) {
    %c0_i32 = arith.constant 0 : i32
    %c0_i32_0 = arith.constant 0 : i32
    %c0_i32_1 = arith.constant 0 : i32
    return %c0_i32, %c0_i32_0 : i32, i32
  }
  func.func @transform_2(%arg0: i32) -> (i32, i32) {
    %c0_i32 = arith.constant 0 : i32
    %c0_i32_0 = arith.constant 0 : i32
    return %arg0, %c0_i32 : i32, i32
  }
  func.func @transform_3(%arg0: i32) -> (i32, i32) {
    %c0_i32 = arith.constant 0 : i32
    %c0_i32_0 = arith.constant 0 : i32
    %c0_i32_1 = arith.constant 0 : i32
    return %c0_i32, %c0_i32_0 : i32, i32
  }
  func.func @transform_4(%arg0: i32) -> (i32, i32) {
    %c0_i32 = arith.constant 0 : i32
    %c0_i32_0 = arith.constant 0 : i32
    return %arg0, %c0_i32 : i32, i32
  }
}

</mosaic_0001>

<bundles_post_ra>
// kernel: multi_similarity_loss.1
= control target key start
LH: loop header
LB: loop body
LE: loop exit
PB: predicated region body
PF: predicated region fallthrough
CT: control target
= control target key end

     0   :  { %v1412_v2 = vmov 0   ;;  %v50_v24 = vlaneseq  ;;  %vm1413_vm2 = vmmov 1   ;;  %s1628_s1 = inlined_call_operand.vmem [shape: f32[128,128], index: 1, kind: input, shape index: {}]   ;;  %s1629_s2 = inlined_call_operand.vmem [shape: s32[128,1], index: 2, kind: input, shape index: {}]   ;;  %s1630_s3 = inlined_call_operand.vmem [shape: s32[1,128], index: 3, kind: input, shape index: {}]   ;;  %s1631_s0 = inlined_call_operand.vmem [shape: f32[128,128], index: 0, kind: input, shape index: {}]   ;;  %s1632_s4 = inlined_call_operand.vmem [shape: f32[128,1], index: 4, kind: output, shape index: {}]  }
   0x1   :  { %v115_v0 = vld [vmem:[%s1628_s1 + $0x78] sm:$0xff]  ;;  %v114_v1 = vld [vmem:[%s1628_s1 + $0x70] sm:$0xff]  ;;  %1402 = vset.pattern.permute.xlu0 %v1412_v2  ;;  %v113_v3 = vld [vmem:[%s1628_s1 + $0x68] sm:$0xff] }
   0x2   :  { %116 = vmatpush.msra.mxu0 %v115_v0  ;;  %1352 = vmatpush.msra.mxu2 %v115_v0  ;;  %v112_v4 = vld [vmem:[%s1628_s1 + $0x60] sm:$0xff]  ;;  %v111_v6 = vld [vmem:[%s1628_s1 + $0x58] sm:$0xff]  ;;  %v110_v7 = vld [vmem:[%s1628_s1 + $0x50] sm:$0xff]  ;;  %v198_v27 = vand.u32 127, %v50_v24  ;;  %v51_v28 = vshrl.u32 %v50_v24, 7 }
   0x3   :  { %1353 = vmatpush.msra.mxu3 %v115_v0  ;;  %1351 = vmatpush.msra.mxu1 %v115_v0  ;;  %v33_v5 = vld [vmem:[%s1629_s2] sm:$0xff]  ;;  %v109_v8 = vld [vmem:[%s1628_s1 + $0x48] sm:$0xff]  ;;  %v107_v10 = vld [vmem:[%s1628_s1 + $0x38] sm:$0xff] }
   0x4   :  { %117 = vmatpush.msra.mxu0 %v114_v1  ;;  %1355 = vmatpush.msra.mxu2 %v114_v1  ;;  %v108_v9 = vld [vmem:[%s1628_s1 + $0x40] sm:$0xff]  ;;  %v106_v11 = vld [vmem:[%s1628_s1 + $0x30] sm:$0xff]  ;;  %v105_v12 = vld [vmem:[%s1628_s1 + $0x28] sm:$0xff]  ;;  %vm285_vm1 = vcmp.lt.s32.totalorder %v198_v27, 8  ;;  %vm199_vm4 = vcmp.eq.s32.totalorder %v51_v28, %v198_v27 }
   0x5   :  { %1356 = vmatpush.msra.mxu3 %v114_v1  ;;  %1354 = vmatpush.msra.mxu1 %v114_v1  ;;  %v104_v13 = vld [vmem:[%s1628_s1 + $0x20] sm:$0xff]  ;;  %v103_v14 = vld [vmem:[%s1628_s1 + $0x18] sm:$0xff]  ;;  %v102_v15 = vld [vmem:[%s1628_s1 + $0x10] sm:$0xff] }
   0x6   :  { %118 = vmatpush.msra.mxu0 %v113_v3  ;;  %287 = vperm.xlu0 %1402, %v33_v5   ;;  %v101_v16 = vld [vmem:[%s1628_s1 + $0x8] sm:$0xff]  ;;  %v100_v17 = vld [vmem:[%s1628_s1] sm:$0xff]  ;;  %v27_v37 = vld [vmem:[%s1631_s0 + $0x50] sm:$0xff] }
   0x7   :  { %1358 = vmatpush.msra.mxu2 %v113_v3  ;;  %1359 = vmatpush.msra.mxu3 %v113_v3  ;;  %v17_v18 = vld [vmem:[%s1631_s0] sm:$0xff]  ;;  %v26_v22 = vld [vmem:[%s1631_s0 + $0x48] sm:$0xff]  ;;  %v31_v38 = vld [vmem:[%s1631_s0 + $0x70] sm:$0xff] }
   0x8   :  { %119 = vmatpush.msra.mxu0 %v112_v4  ;;  %1357 = vmatpush.msra.mxu1 %v113_v3  ;;  %v25_v19 = vld [vmem:[%s1631_s0 + $0x40] sm:$0xff]  ;;  %v30_v23 = vld [vmem:[%s1631_s0 + $0x68] sm:$0xff]  ;;  %v19_v39 = vld [vmem:[%s1631_s0 + $0x10] sm:$0xff] }
   0x9   :  { %1361 = vmatpush.msra.mxu2 %v112_v4  ;;  %1362 = vmatpush.msra.mxu3 %v112_v4  ;;  %v29_v20 = vld [vmem:[%s1631_s0 + $0x60] sm:$0xff]  ;;  %v18_v35 = vld [vmem:[%s1631_s0 + $0x8] sm:$0xff]  ;;  %v23_v40 = vld [vmem:[%s1631_s0 + $0x30] sm:$0xff] }
   0xa   :  { %120 = vmatpush.msra.mxu0 %v111_v6  ;;  %1360 = vmatpush.msra.mxu1 %v112_v4  ;;  %v21_v21 = vld [vmem:[%s1631_s0 + $0x20] sm:$0xff]  ;;  %v22_v36 = vld [vmem:[%s1631_s0 + $0x28] sm:$0xff]  ;;  %v28_v41 = vld [vmem:[%s1631_s0 + $0x58] sm:$0xff] }
   0xb   :  { %1364 = vmatpush.msra.mxu2 %v111_v6  ;;  %1365 = vmatpush.msra.mxu3 %v111_v6  ;;  %v1403_v25 = vld [vmem:[%s1630_s3] ss:$0 sm:$0xff]  ;;  %v32_v42 = vld [vmem:[%s1631_s0 + $0x78] sm:$0xff] }
   0xc   :  { %121 = vmatpush.msra.mxu0 %v110_v7  ;;  %1363 = vmatpush.msra.mxu1 %v111_v6  ;;  %v20_v44 = vld [vmem:[%s1631_s0 + $0x18] sm:$0xff]  ;;  %v1414_v6 = vmov 0.0  }
   0xd   :  { %1367 = vmatpush.msra.mxu2 %v110_v7  ;;  %1368 = vmatpush.msra.mxu3 %v110_v7  ;;  %v24_v45 = vld [vmem:[%s1631_s0 + $0x38] sm:$0xff] }
   0xe   :  { %122 = vmatpush.msra.mxu0 %v109_v8  ;;  %1366 = vmatpush.msra.mxu1 %v110_v7 }
   0xf   :  { %1370 = vmatpush.msra.mxu2 %v109_v8  ;;  %1371 = vmatpush.msra.mxu3 %v109_v8 }
  0x10   :  { %123 = vmatpush.msra.mxu0 %v108_v9  ;;  %1369 = vmatpush.msra.mxu1 %v109_v8 }
  0x11   :  { %1373 = vmatpush.msra.mxu2 %v108_v9  ;;  %1374 = vmatpush.msra.mxu3 %v108_v9 }
  0x12   :  { %124 = vmatpush.msra.mxu0 %v107_v10  ;;  %1372 = vmatpush.msra.mxu1 %v108_v9 }
  0x13   :  { %1376 = vmatpush.msra.mxu2 %v107_v10  ;;  %1377 = vmatpush.msra.mxu3 %v107_v10 }
  0x14   :  { %125 = vmatpush.msra.mxu0 %v106_v11  ;;  %1375 = vmatpush.msra.mxu1 %v107_v10 }
  0x15   :  { %1379 = vmatpush.msra.mxu2 %v106_v11  ;;  %1380 = vmatpush.msra.mxu3 %v106_v11 }
  0x16   :  { %126 = vmatpush.msra.mxu0 %v105_v12  ;;  %1378 = vmatpush.msra.mxu1 %v106_v11 }
  0x17   :  { %1382 = vmatpush.msra.mxu2 %v105_v12  ;;  %1383 = vmatpush.msra.mxu3 %v105_v12 }
  0x18   :  { %127 = vmatpush.msra.mxu0 %v104_v13  ;;  %1381 = vmatpush.msra.mxu1 %v105_v12 }
  0x19   :  { %1385 = vmatpush.msra.mxu2 %v104_v13  ;;  %1386 = vmatpush.msra.mxu3 %v104_v13 }
  0x1a   :  { %128 = vmatpush.msra.mxu0 %v103_v14  ;;  %1384 = vmatpush.msra.mxu1 %v104_v13 }
  0x1b   :  { %1388 = vmatpush.msra.mxu2 %v103_v14  ;;  %1389 = vmatpush.msra.mxu3 %v103_v14 }
  0x1c   :  { %129 = vmatpush.msra.mxu0 %v102_v15  ;;  %1387 = vmatpush.msra.mxu1 %v103_v14 }
  0x1d   :  { %1391 = vmatpush.msra.mxu2 %v102_v15  ;;  %1392 = vmatpush.msra.mxu3 %v102_v15 }
  0x1e   :  { %130 = vmatpush.msra.mxu0 %v101_v16  ;;  %1390 = vmatpush.msra.mxu1 %v102_v15 }
  0x1f   :  { %1394 = vmatpush.msra.mxu2 %v101_v16  ;;  %1395 = vmatpush.msra.mxu3 %v101_v16 }
  0x20   :  { %131 = vmatpush.msra.mxu0 %v100_v17  ;;  %1393 = vmatpush.msra.mxu1 %v101_v16 }
  0x21   :  { %132 = vmatmul.f32.vlgmr.msra.gmra.mxu0 %v17_v18  ;;  %1397 = vmatpush.msra.mxu2 %v100_v17 }
  0x22   :  { %1398 = vmatpush.msra.mxu3 %v100_v17  ;;  %1396 = vmatpush.msra.mxu1 %v100_v17 }
  0x23   :  { %156 = vmatmul.f32.vlgmr.msra.gmra.mxu2 %v25_v19  ;;  %168 = vmatmul.f32.vlgmr.msra.gmra.mxu3 %v29_v20 }
  0x24   :  { %144 = vmatmul.f32.vlgmr.msra.gmra.mxu1 %v21_v21 }
  0x29   :  { %135 = vmatmul.f32.gmra.mxu0 %v18_v35 }
  0x2b   :  { %159 = vmatmul.f32.gmra.mxu2 %v26_v22  ;;  %171 = vmatmul.f32.gmra.mxu3 %v30_v23 }
  0x2c   :  { %147 = vmatmul.f32.gmra.mxu1 %v22_v36 }
  0x31   :  { %138 = vmatmul.f32.gmra.mxu0 %v19_v39 }
  0x33   :  { %162 = vmatmul.f32.gmra.mxu2 %v27_v37  ;;  %174 = vmatmul.f32.gmra.mxu3 %v31_v38 }
  0x34   :  { %150 = vmatmul.f32.gmra.mxu1 %v23_v40 }
  0x39   :  { %141 = vmatmul.f32.gmra.mxu0 %v20_v44 }
  0x3b   :  { %165 = vmatmul.f32.gmra.mxu2 %v28_v41  ;;  %177 = vmatmul.f32.gmra.mxu3 %v32_v42 }
  0x3c   :  { %153 = vmatmul.f32.gmra.mxu1 %v24_v45 }
  0x78   :  { %v288_v26 = vpop.permute.xlu0 %287 }
  0x79   :  { %vm335_vm0 = vcmp.eq.s32.totalorder %v288_v26, %v1403_v25 }
  0x7a   :  { %vm401_vm3 = vmxor %vm335_vm0, %vm1413_vm2 }
  0x7b   :  { %vm1512_vm5 = vmand %vm401_vm3, %vm285_vm1 }
  0x7c   :  { %vm1516_vm6 = vmand %vm335_vm0, %vm285_vm1  ;;  %vm1313_vm0 = vcmask 7168  }
  0x7d   :  { %1315 = vst.msk [vmem:[%s1632_s4 + $0x8] sm:$0xff] %vm1313_vm0, %v1414_v6 }
  0x7e   :  { %1316 = vst.msk [vmem:[%s1632_s4 + $0x10] sm:$0xff] %vm1313_vm0, %v1414_v6 }
  0x7f   :  { %1317 = vst.msk [vmem:[%s1632_s4 + $0x18] sm:$0xff] %vm1313_vm0, %v1414_v6 }
  0x80   :  { %1318 = vst.msk [vmem:[%s1632_s4 + $0x20] sm:$0xff] %vm1313_vm0, %v1414_v6 }
  0x81   :  { %1319 = vst.msk [vmem:[%s1632_s4 + $0x28] sm:$0xff] %vm1313_vm0, %v1414_v6 }
  0x82   :  { %1320 = vst.msk [vmem:[%s1632_s4 + $0x30] sm:$0xff] %vm1313_vm0, %v1414_v6 }
  0x83   :  { %1321 = vst.msk [vmem:[%s1632_s4 + $0x38] sm:$0xff] %vm1313_vm0, %v1414_v6 }
  0x84   :  { %1322 = vst.msk [vmem:[%s1632_s4 + $0x40] sm:$0xff] %vm1313_vm0, %v1414_v6 }
  0x85   :  { %1323 = vst.msk [vmem:[%s1632_s4 + $0x48] sm:$0xff] %vm1313_vm0, %v1414_v6 }
  0x86   :  { %1324 = vst.msk [vmem:[%s1632_s4 + $0x50] sm:$0xff] %vm1313_vm0, %v1414_v6 }
  0x87   :  { %1325 = vst.msk [vmem:[%s1632_s4 + $0x58] sm:$0xff] %vm1313_vm0, %v1414_v6 }
  0x88   :  { %1326 = vst.msk [vmem:[%s1632_s4 + $0x60] sm:$0xff] %vm1313_vm0, %v1414_v6 }
  0x89   :  { %1327 = vst.msk [vmem:[%s1632_s4 + $0x68] sm:$0xff] %vm1313_vm0, %v1414_v6 }
  0x8a   :  { %1328 = vst.msk [vmem:[%s1632_s4 + $0x70] sm:$0xff] %vm1313_vm0, %v1414_v6 }
  0x8b   :  { %1329 = vst.msk [vmem:[%s1632_s4 + $0x78] sm:$0xff] %vm1313_vm0, %v1414_v6 }
  0x9e   :  { %v133_v30 = vpop.f32.mrf.mxu0 }
  0x9f   :  { %v234_v31 = vsel %vm199_vm4, 1.5, %v133_v30 }
  0xa0   :  { %v481_v33 = vsel %vm1512_vm5, %v234_v31, -inf  ;;  %vm369_vm7 = vcmp.lt.f32.partialorder %v234_v31, 0.99999  ;;  %v705_v48 = vmul.f32 -2.0, %v234_v31  ;;  %v817_v49 = vmul.f32 50.0, %v234_v31 }
  0xa1   :  { %497 = vmax.xlane.f32.xlu0 %v481_v33  ;;  %vm385_vm8 = vmand %vm1516_vm6, %vm369_vm7  ;;  %v145_v43 = vpop.f32.mrf.mxu1 }
  0xa2   :  { %v433_v34 = vsel %vm385_vm8, %v234_v31, inf  ;;  %v721_v52 = vmul.f32 1.442695, %v705_v48  ;;  %v833_v53 = vmul.f32 1.442695, %v817_v49 }
  0xa3   :  { %449 = vmin.xlane.f32.xlu1 %v433_v34 }
  0xa4   :  { %1404 = vpow2.f32 %v721_v52 }
  0xa5   :  { %1406 = vpow2.f32 %v833_v53 }
  0xa6   :  { %v157_v46 = vpop.f32.mrf.mxu2  ;;  %v169_v47 = vpop.f32.mrf.mxu3 }
  0xa7   :  { %v136_v0 = vpop.f32.mrf.mxu0 }
  0xa9   :  { %v148_v1 = vpop.f32.mrf.mxu1 }
  0xaa   :  { %v1405_v60 = vpop.eup %1404 }
  0xab   :  { %v1407_v61 = vpop.eup %1406 }
  0xae   :  { %v160_v50 = vpop.f32.mrf.mxu2  ;;  %v172_v51 = vpop.f32.mrf.mxu3 }
  0xaf   :  { %v139_v4 = vpop.f32.mrf.mxu0 }
  0xb1   :  { %v151_v5 = vpop.f32.mrf.mxu1 }
  0xb6   :  { %v163_v2 = vpop.f32.mrf.mxu2  ;;  %v175_v3 = vpop.f32.mrf.mxu3 }
  0xb7   :  { %v142_v9 = vpop.f32.mrf.mxu0 }
  0xb9   :  { %v154_v10 = vpop.f32.mrf.mxu1 }
  0xbe   :  { %v166_v7 = vpop.f32.mrf.mxu2  ;;  %v178_v8 = vpop.f32.mrf.mxu3 }
 0x114   :  { %v498_v54 = vpop.xlane.xlu0 %497 }
 0x115   :  { %v545_v55 = vadd.f32 0.1, %v498_v54 }
 0x116   :  { %v450_v56 = vpop.xlane.xlu1 %449 }
 0x117   :  { %v561_v57 = vmin.f32 %v545_v55, 0.99999  ;;  %v1335_v58 = vadd.f32 -0.1, %v450_v56 }
 0x119   :  { %vm577_vm9 = vcmp.gt.f32.partialorder %v498_v54, %v1335_v58  ;;  %vm593_vm10 = vcmp.lt.f32.partialorder %v450_v56, %v561_v57  ;;  %vm641_vm11 = vcmp.lt.f32.partialorder %v234_v31, %v561_v57  ;;  %vm673_vm12 = vcmp.gt.f32.partialorder %v234_v31, %v1335_v58 }
 0x11a   :  { %vm1554_vm13 = vmand %vm577_vm9, %vm593_vm10 }
 0x11b   :  { %vm657_vm14 = vmand %vm1516_vm6, %vm641_vm11 }
 0x11c   :  { %v753_v62 = vsel %vm657_vm14, %v1405_v60, 0.0  ;;  %vm689_vm15 = vmand %vm1512_vm5, %vm673_vm12 }
 0x11d   :  { %769 = vadd.xlane.f32.xlu1 %v753_v62  ;;  %v865_v63 = vsel %vm689_vm15, %v1407_v61, 0.0 }
 0x11e   :  { %881 = vadd.xlane.f32.xlu2 %v865_v63 }
 0x190   :  { %v770_v11 = vpop.xlane.xlu1 %769 }
 0x191   :  { %v882_v12 = vpop.xlane.xlu2 %881  ;;  %v929_v13 = vmul.f32 2.7182817, %v770_v11 }
 0x192   :  { %v945_v14 = vmul.f32 1.3887944e-11, %v882_v12 }
 0x193   :  { %v961_v15 = vadd.f32 1.0, %v929_v13  ;;  %v964_v17 = vmul.f32 -0.5, %v929_v13  ;;  %v967_v21 = vand.u32 2147483647, %v929_v13 }
 0x194   :  { %v1121_v16 = vadd.f32 1.0, %v945_v14  ;;  %v1124_v18 = vmul.f32 -0.5, %v945_v14  ;;  %v1127_v22 = vand.u32 2147483647, %v945_v14 }
 0x195   :  { %1408 = vlog2.f32 %v961_v15  ;;  %v965_v19 = vadd.f32 1.0, %v964_v17  ;;  %vm968_vm1 = vcmp.lt.f32.partialorder %v967_v21, 0.0004427343 }
 0x196   :  { %1410 = vlog2.f32 %v1121_v16  ;;  %v1125_v20 = vadd.f32 1.0, %v1124_v18  ;;  %vm1128_vm2 = vcmp.lt.f32.partialorder %v1127_v22, 0.0004427343 }
 0x197   :  { %v966_v26 = vmul.f32 %v965_v19, %v929_v13 }
 0x198   :  { %v1126_v28 = vmul.f32 %v1125_v20, %v945_v14 }
 0x19b   :  { %v1409_v23 = vpop.eup %1408 }
 0x19c   :  { %v1411_v24 = vpop.eup %1410  ;;  %v963_v25 = vmul.f32 0.6931472, %v1409_v23 }
 0x19d   :  { %v1123_v27 = vmul.f32 0.6931472, %v1411_v24 }
 0x19e   :  { %v969_v29 = vsel %vm968_vm1, %v966_v26, %v963_v25 }
 0x19f   :  { %v1129_v30 = vsel %vm1128_vm2, %v1126_v28, %v1123_v27  ;;  %v1105_v31 = vmul.f32 0.5, %v969_v29 }
 0x1a0   :  { %v1265_v32 = vmul.f32 0.025, %v1129_v30 }
 0x1a2   :  { %v1281_v33 = vadd.f32 %v1265_v32, %v1105_v31 }
 0x1a4   :  { %v1297_v34 = vsel %vm1554_vm13, %v1281_v33, 0.0 }
 0x1a5   :  { %1314 = vst.msk [vmem:[%s1632_s4] sm:$0xff] %vm1313_vm0, %v1297_v34 }

</bundles_post_ra>
